<compile_context>
chip_gen: v7x
topology: tpu7x:2x2x1
jax: 0.10.0
libtpu: 0.0.40
codegen_flags: <defaults>
</compile_context>

<pallas_src>
import jax
import jax.numpy as jnp
from jax.experimental import pallas as pl
from jax.experimental.pallas import tpu as pltpu


C_PAD = 128    # lane-dense classifier width (real classes live in [:n_classes])
LANE = 128
SUBLANE = 8


def _round_up(n, m):
    return ((n + m - 1) // m) * m


def _vmem_bytes(tile, d_in, h1, h2, h3, c_pad, weight_bufs):
    """Rough resident-VMEM estimate for one grid step (bytes)."""
    bf16 = 2
    x_bytes = 2 * tile * d_in * bf16                      # double-buffered bf16 x tile
    out_bytes = 2 * tile * c_pad * bf16                   # double-buffered bf16 out tile
    w_bytes = weight_bufs * (d_in * h1 + h1 * h2 + h2 * h3 + h3 * c_pad) * bf16
    b_bytes = 2 * (h1 + h2 + h3 + c_pad) * 4              # f32 biases (tiny)
    act_bytes = tile * (h1 + h2 + h3 + c_pad) * 4         # f32 intermediates (generous)
    return x_bytes + out_bytes + w_bytes + b_bytes + act_bytes


def _pick_batch_tile(b8, d_in, h_dims, c_pad, *, max_tile, weight_bufs,
                     vmem_budget=40 << 20):
    """Batch tile: multiple of 8, <= max_tile, <= b8, sized against VMEM.

    One tile for small/medium batches (no pure-overhead grid steps on
    single-TC v5e/v6e); split into two steps only when each step keeps
    >= 256 rows, which is when the second v7x TensorCore actually pays off.
    """
    h1, h2, h3 = h_dims
    if b8 > max_tile:
        tile = max_tile
    elif b8 >= 512:
        tile = _round_up(-(-b8 // 2), SUBLANE)            # 2 steps, each >= 256 rows
    else:
        tile = b8                                         # single step
    while tile > SUBLANE and _vmem_bytes(tile, d_in, h1, h2, h3, c_pad,
                                         weight_bufs) > vmem_budget:
        tile = max(SUBLANE, _round_up(tile // 2, SUBLANE))
    return tile


def _fcn_kernel(x_ref, w1_ref, b1_ref, w2_ref, b2_ref, w3_ref, b3_ref,
                wc_ref, bc_ref, out_ref):
    bf16 = jnp.bfloat16
    f32 = jnp.float32

    # fc1 + ReLU (bf16 operands on the MXU, f32 accumulate / elementwise)
    h = jnp.dot(x_ref[...], w1_ref[...], preferred_element_type=f32)
    h = jnp.maximum(h + b1_ref[...], 0.0)
    # TODO(synk): nn.Dropout(0.6) is implemented as eval-mode identity (no RNG mask).

    # fc2 + ReLU
    h = jnp.dot(h.astype(bf16), w2_ref[...], preferred_element_type=f32)
    h = jnp.maximum(h + b2_ref[...], 0.0)

    # fc3 + ReLU
    h = jnp.dot(h.astype(bf16), w3_ref[...], preferred_element_type=f32)
    h = jnp.maximum(h + b3_ref[...], 0.0)

    # classifier, lane-padded to 128 columns (pad columns carry -1e30 bias)
    logits = jnp.dot(h.astype(bf16), wc_ref[...], preferred_element_type=f32)
    logits = logits + bc_ref[...]

    # softmax over the padded class dim; pad columns contribute exp(-huge) = 0
    m = jnp.max(logits, axis=-1, keepdims=True)
    e = jnp.exp(logits - m)
    denom = jnp.sum(e, axis=-1, keepdims=True)
    inv = pl.reciprocal(denom, approx=True)               # EUP slot; ~1e-3 rel error
    out_ref[...] = (e * inv).astype(out_ref.dtype)


def malware_detection_fcn_forward(x, params, n_classes, *, batch_tile=1024):
    """x: (B, input_size) float. params: prepare_fcn_params() output.
    Returns (B, n_classes) float32 probabilities."""
    B, d_in = x.shape
    w1, b1 = params["w1"], params["b1"]   # (d_pad, h1) bf16, (1, h1) f32
    w2, b2 = params["w2"], params["b2"]   # (h1, h2)   bf16, (1, h2) f32
    w3, b3 = params["w3"], params["b3"]   # (h2, h3)   bf16, (1, h3) f32
    wc, bc = params["wc"], params["bc"]   # (h3, C_PAD) bf16, (1, C_PAD) f32
    d_pad, h1 = w1.shape
    h2, h3 = w2.shape[1], w3.shape[1]
    c_pad = wc.shape[1]
    assert d_pad >= d_in

    # One fused pass over x: pad the batch to a multiple of 8 rows and the
    # feature dim to w1's lane-aligned width, and cast to bf16 (halves the
    # kernel's dominant HBM stream). No padding to a full tile multiple.
    b8 = _round_up(B, SUBLANE)
    if b8 != B or d_pad != d_in:
        x = jnp.pad(x, ((0, b8 - B), (0, d_pad - d_in)))
    x = x.astype(jnp.bfloat16)

    # Single-buffer the (constant index_map) weight blocks only when they are
    # big enough for double-buffering to matter on v7x's 64 MiB VMEM.
    single_buf_weights = d_pad >= 2048
    weight_bufs = 1 if single_buf_weights else 2

    tile = _pick_batch_tile(b8, d_pad, (h1, h2, h3), c_pad,
                            max_tile=_round_up(max(batch_tile, SUBLANE), SUBLANE),
                            weight_bufs=weight_bufs)
    grid = (pl.cdiv(b8, tile),)   # last block may be partial; OOB rows are masked

    def const_spec(shape):
        if single_buf_weights:
            return pl.BlockSpec(shape, lambda i: (0, 0),
                                pipeline_mode=pl.Buffered(1))
        return pl.BlockSpec(shape, lambda i: (0, 0))

    vmem_need = _vmem_bytes(tile, d_pad, h1, h2, h3, c_pad, weight_bufs) + (2 << 20)
    vmem_limit = None if vmem_need <= (16 << 20) else min(vmem_need, 56 << 20)

    out = pl.pallas_call(
        _fcn_kernel,
        out_shape=jax.ShapeDtypeStruct((b8, c_pad), jnp.bfloat16),
        grid_spec=pltpu.PrefetchScalarGridSpec(
            num_scalar_prefetch=0,
            grid=grid,
            in_specs=[
                pl.BlockSpec((tile, d_pad), lambda i: (i, 0)),
                const_spec((d_pad, h1)),
                const_spec((1, h1)),
                const_spec((h1, h2)),
                const_spec((1, h2)),
                const_spec((h2, h3)),
                const_spec((1, h3)),
                const_spec((h3, c_pad)),
                const_spec((1, c_pad)),
            ],
            out_specs=pl.BlockSpec((tile, c_pad), lambda i: (i, 0)),
        ),
        compiler_params=pltpu.CompilerParams(
            dimension_semantics=("parallel",),
            vmem_limit_bytes=vmem_limit,
        ),
    )(x, w1, b1, w2, b2, w3, b3, wc, bc)

    return out[:B, :n_classes].astype(jnp.float32)


def init_params(key, input_size, hidden_units=(512, 256, 128), n_classes=2):
    """Deterministic PyTorch-style init: U(-1/sqrt(fan_in), 1/sqrt(fan_in)).
    Weights stored as (in_features, out_features) — i.e. W.T of nn.Linear."""
    dims = [input_size, *hidden_units, n_classes]
    names = ["1", "2", "3", "c"]
    params = {}
    for name, fan_in, fan_out in zip(names, dims[:-1], dims[1:]):
        key, kw, kb = jax.random.split(key, 3)
        bound = 1.0 / (fan_in ** 0.5)
        params[f"w{name}"] = jax.random.uniform(
            kw, (fan_in, fan_out), jnp.float32, minval=-bound, maxval=bound)
        params[f"b{name}"] = jax.random.uniform(
            kb, (1, fan_out), jnp.float32, minval=-bound, maxval=bound)
    return params


def prepare_fcn_params(params_f32, n_classes, pad_classes=C_PAD):
    """Cast weights to bf16 (biases stay f32), pad w1's input-feature dim to a
    multiple of 128 (zero rows), and pad the classifier to a lane-dense width
    (zero weight cols + -1e30 bias so its softmax terms vanish)."""
    bf16 = jnp.bfloat16
    p = {}
    w1 = params_f32["w1"].astype(bf16)            # (d_in, h1)
    d_in = w1.shape[0]
    d_pad = _round_up(d_in, LANE)
    if d_pad != d_in:
        w1 = jnp.pad(w1, ((0, d_pad - d_in), (0, 0)))
    p["w1"], p["b1"] = w1, params_f32["b1"].astype(jnp.float32)
    for name in ("2", "3"):
        p[f"w{name}"] = params_f32[f"w{name}"].astype(bf16)
        p[f"b{name}"] = params_f32[f"b{name}"].astype(jnp.float32)
    wc = params_f32["wc"].astype(bf16)            # (h3, n_classes)
    bc = params_f32["bc"].astype(jnp.float32)     # (1, n_classes)
    h3 = wc.shape[0]
    p["wc"] = jnp.zeros((h3, pad_classes), bf16).at[:, :n_classes].set(wc)
    p["bc"] = jnp.full((1, pad_classes), -1e30, jnp.float32).at[:, :n_classes].set(bc)
    return p


def reference_forward(x, prepared, n_classes):
    """Pure-JAX reference on the same prepared (bf16) params."""
    bf16 = jnp.bfloat16
    d_in = x.shape[1]
    w1 = prepared["w1"][:d_in]    # padded rows are zero, so slicing is equivalent
    h = jnp.maximum(jnp.dot(x.astype(bf16), w1,
                            preferred_element_type=jnp.float32) + prepared["b1"], 0.0)
    h = jnp.maximum(jnp.dot(h.astype(bf16), prepared["w2"],
                            preferred_element_type=jnp.float32) + prepared["b2"], 0.0)
    h = jnp.maximum(jnp.dot(h.astype(bf16), prepared["w3"],
                            preferred_element_type=jnp.float32) + prepared["b3"], 0.0)
    logits = jnp.dot(h.astype(bf16), prepared["wc"][:, :n_classes],
                     preferred_element_type=jnp.float32) + prepared["bc"][:, :n_classes]
    return jax.nn.softmax(logits, axis=-1)


if __name__ == "__main__":
    key = jax.random.PRNGKey(0)
    batch = 13                # ragged batch: exercises the 8-row pad + bf16 cast path
    input_size = 384          # small synthetic feature dim (already lane-aligned)
    hidden_units = (512, 256, 128)
    n_classes = 2

    k_x, k_p = jax.random.split(key)
    x = jax.random.uniform(k_x, (batch, input_size), jnp.float32)
    params_f32 = init_params(k_p, input_size, hidden_units, n_classes)
    params = prepare_fcn_params(params_f32, n_classes)

    probs = malware_detection_fcn_forward(x, params, n_classes)
    probs = jax.block_until_ready(probs)

    ref = reference_forward(x, params, n_classes)
    assert probs.shape == (batch, n_classes)
    # bf16 output + approx reciprocal need a few 1e-3 of absolute slack.
    assert jnp.allclose(probs, ref, atol=8e-3, rtol=8e-3)
    assert jnp.allclose(jnp.sum(probs, axis=-1), 1.0, atol=2e-2)

    print("KERNEL_OK")
</pallas_src>

<mosaic_0001>
module attributes {stable_mosaic.version = 11 : i64} {
  func.func @_fcn_kernel(%arg0: i32, %arg1: memref<16x384xbf16, #tpu.memory_space<vmem>>, %arg2: memref<384x512xbf16, #tpu.memory_space<vmem>>, %arg3: memref<1x512xf32, #tpu.memory_space<vmem>>, %arg4: memref<512x256xbf16, #tpu.memory_space<vmem>>, %arg5: memref<1x256xf32, #tpu.memory_space<vmem>>, %arg6: memref<256x128xbf16, #tpu.memory_space<vmem>>, %arg7: memref<1x128xf32, #tpu.memory_space<vmem>>, %arg8: memref<128x128xbf16, #tpu.memory_space<vmem>>, %arg9: memref<1x128xf32, #tpu.memory_space<vmem>>, %arg10: memref<16x128xbf16, #tpu.memory_space<vmem>>) attributes {dimension_semantics = [#tpu.dimension_semantics<parallel>], iteration_bounds = array<i64: 1>, scalar_prefetch = 0 : i64, scratch_operands = 0 : i64, tpu.core_type = #tpu.core_type<tc>, window_params = [{transform_indices = @transform_0, window_bounds = array<i64: 16, 384>}, {pipeline_mode = #tpu.pipeline_mode<synchronous>, transform_indices = @transform_1, window_bounds = array<i64: 384, 512>}, {pipeline_mode = #tpu.pipeline_mode<synchronous>, transform_indices = @transform_2, window_bounds = array<i64: 1, 512>}, {pipeline_mode = #tpu.pipeline_mode<synchronous>, transform_indices = @transform_3, window_bounds = array<i64: 512, 256>}, {pipeline_mode = #tpu.pipeline_mode<synchronous>, transform_indices = @transform_4, window_bounds = array<i64: 1, 256>}, {pipeline_mode = #tpu.pipeline_mode<synchronous>, transform_indices = @transform_5, window_bounds = array<i64: 256, 128>}, {pipeline_mode = #tpu.pipeline_mode<synchronous>, transform_indices = @transform_6, window_bounds = array<i64: 1, 128>}, {pipeline_mode = #tpu.pipeline_mode<synchronous>, transform_indices = @transform_7, window_bounds = array<i64: 128, 128>}, {pipeline_mode = #tpu.pipeline_mode<synchronous>, transform_indices = @transform_8, window_bounds = array<i64: 1, 128>}, {transform_indices = @transform_9, window_bounds = array<i64: 16, 128>}]} {
    %c0 = arith.constant 0 : index
    %c0_0 = arith.constant 0 : index
    %0 = vector.load %arg1[%c0, %c0_0] : memref<16x384xbf16, #tpu.memory_space<vmem>>, vector<16x384xbf16>
    %c0_1 = arith.constant 0 : index
    %c0_2 = arith.constant 0 : index
    %1 = vector.load %arg2[%c0_1, %c0_2] : memref<384x512xbf16, #tpu.memory_space<vmem>>, vector<384x512xbf16>
    %cst = arith.constant dense<0.000000e+00> : vector<16x512xf32>
    %2 = tpu.matmul %0, %1, %cst {dimension_numbers = #tpu.dot_dimension_numbers<[1], [0], [0], [1], [0, 0, 1, 1], [], []>} : vector<16x384xbf16>, vector<384x512xbf16>, vector<16x512xf32> -> vector<16x512xf32>
    %c0_3 = arith.constant 0 : index
    %c0_4 = arith.constant 0 : index
    %3 = vector.load %arg3[%c0_3, %c0_4] : memref<1x512xf32, #tpu.memory_space<vmem>>, vector<1x512xf32>
    %4 = vector.broadcast %3 : vector<1x512xf32> to vector<16x512xf32>
    %5 = arith.addf %2, %4 : vector<16x512xf32>
    %cst_5 = arith.constant 0.000000e+00 : f32
    %6 = vector.broadcast %cst_5 : f32 to vector<16x512xf32>
    %7 = arith.maximumf %5, %6 : vector<16x512xf32>
    %8 = arith.truncf %7 : vector<16x512xf32> to vector<16x512xbf16>
    %c0_6 = arith.constant 0 : index
    %c0_7 = arith.constant 0 : index
    %9 = vector.load %arg4[%c0_6, %c0_7] : memref<512x256xbf16, #tpu.memory_space<vmem>>, vector<512x256xbf16>
    %cst_8 = arith.constant dense<0.000000e+00> : vector<16x256xf32>
    %10 = tpu.matmul %8, %9, %cst_8 {dimension_numbers = #tpu.dot_dimension_numbers<[1], [0], [0], [1], [0, 0, 1, 1], [], []>} : vector<16x512xbf16>, vector<512x256xbf16>, vector<16x256xf32> -> vector<16x256xf32>
    %c0_9 = arith.constant 0 : index
    %c0_10 = arith.constant 0 : index
    %11 = vector.load %arg5[%c0_9, %c0_10] : memref<1x256xf32, #tpu.memory_space<vmem>>, vector<1x256xf32>
    %12 = vector.broadcast %11 : vector<1x256xf32> to vector<16x256xf32>
    %13 = arith.addf %10, %12 : vector<16x256xf32>
    %cst_11 = arith.constant 0.000000e+00 : f32
    %14 = vector.broadcast %cst_11 : f32 to vector<16x256xf32>
    %15 = arith.maximumf %13, %14 : vector<16x256xf32>
    %16 = arith.truncf %15 : vector<16x256xf32> to vector<16x256xbf16>
    %c0_12 = arith.constant 0 : index
    %c0_13 = arith.constant 0 : index
    %17 = vector.load %arg6[%c0_12, %c0_13] : memref<256x128xbf16, #tpu.memory_space<vmem>>, vector<256x128xbf16>
    %cst_14 = arith.constant dense<0.000000e+00> : vector<16x128xf32>
    %18 = tpu.matmul %16, %17, %cst_14 {dimension_numbers = #tpu.dot_dimension_numbers<[1], [0], [0], [1], [0, 0, 1, 1], [], []>} : vector<16x256xbf16>, vector<256x128xbf16>, vector<16x128xf32> -> vector<16x128xf32>
    %c0_15 = arith.constant 0 : index
    %c0_16 = arith.constant 0 : index
    %19 = vector.load %arg7[%c0_15, %c0_16] : memref<1x128xf32, #tpu.memory_space<vmem>>, vector<1x128xf32>
    %20 = vector.broadcast %19 : vector<1x128xf32> to vector<16x128xf32>
    %21 = arith.addf %18, %20 : vector<16x128xf32>
    %cst_17 = arith.constant 0.000000e+00 : f32
    %22 = vector.broadcast %cst_17 : f32 to vector<16x128xf32>
    %23 = arith.maximumf %21, %22 : vector<16x128xf32>
    %24 = arith.truncf %23 : vector<16x128xf32> to vector<16x128xbf16>
    %c0_18 = arith.constant 0 : index
    %c0_19 = arith.constant 0 : index
    %25 = vector.load %arg8[%c0_18, %c0_19] : memref<128x128xbf16, #tpu.memory_space<vmem>>, vector<128x128xbf16>
    %cst_20 = arith.constant dense<0.000000e+00> : vector<16x128xf32>
    %26 = tpu.matmul %24, %25, %cst_20 {dimension_numbers = #tpu.dot_dimension_numbers<[1], [0], [0], [1], [0, 0, 1, 1], [], []>} : vector<16x128xbf16>, vector<128x128xbf16>, vector<16x128xf32> -> vector<16x128xf32>
    %c0_21 = arith.constant 0 : index
    %c0_22 = arith.constant 0 : index
    %27 = vector.load %arg9[%c0_21, %c0_22] : memref<1x128xf32, #tpu.memory_space<vmem>>, vector<1x128xf32>
    %28 = vector.broadcast %27 : vector<1x128xf32> to vector<16x128xf32>
    %29 = arith.addf %26, %28 : vector<16x128xf32>
    %cst_23 = arith.constant dense<0xFF800000> : vector<16xf32>
    %30 = vector.multi_reduction <maximumf>, %29, %cst_23 [1] : vector<16x128xf32> to vector<16xf32>
    %31 = vector.shape_cast %30 : vector<16xf32> to vector<16x1xf32>
    %32 = vector.broadcast %31 : vector<16x1xf32> to vector<16x128xf32>
    %33 = arith.subf %29, %32 : vector<16x128xf32>
    %34 = math.exp %33 : vector<16x128xf32>
    %cst_24 = arith.constant dense<0.000000e+00> : vector<16xf32>
    %35 = vector.multi_reduction <add>, %34, %cst_24 [1] : vector<16x128xf32> to vector<16xf32>
    %36 = vector.shape_cast %35 : vector<16xf32> to vector<16x1xf32>
    %37 = tpu.reciprocal %36 {approx = true} : vector<16x1xf32> -> vector<16x1xf32>
    %38 = vector.broadcast %37 : vector<16x1xf32> to vector<16x128xf32>
    %39 = arith.mulf %34, %38 : vector<16x128xf32>
    %40 = arith.truncf %39 : vector<16x128xf32> to vector<16x128xbf16>
    %c0_25 = arith.constant 0 : index
    %c0_26 = arith.constant 0 : index
    %41 = vector.load %arg10[%c0_25, %c0_26] : memref<16x128xbf16, #tpu.memory_space<vmem>>, vector<16x128xbf16>
    tpu.vector_store %arg10[%c0_25, %c0_26], %40 {strides = array<i32>} : memref<16x128xbf16, #tpu.memory_space<vmem>>, vector<16x128xbf16>,
    return
  }
  func.func @transform_0(%arg0: i32) -> (i32, i32) {
    %c0_i32 = arith.constant 0 : i32
    %c0_i32_0 = arith.constant 0 : i32
    return %arg0, %c0_i32 : i32, i32
  }
  func.func @transform_1(%arg0: i32) -> (i32, i32) {
    %c0_i32 = arith.constant 0 : i32
    %c0_i32_0 = arith.constant 0 : i32
    %c0_i32_1 = arith.constant 0 : i32
    return %c0_i32, %c0_i32_0 : i32, i32
  }
  func.func @transform_2(%arg0: i32) -> (i32, i32) {
    %c0_i32 = arith.constant 0 : i32
    %c0_i32_0 = arith.constant 0 : i32
    %c0_i32_1 = arith.constant 0 : i32
    return %c0_i32, %c0_i32_0 : i32, i32
  }
  func.func @transform_3(%arg0: i32) -> (i32, i32) {
    %c0_i32 = arith.constant 0 : i32
    %c0_i32_0 = arith.constant 0 : i32
    %c0_i32_1 = arith.constant 0 : i32
    return %c0_i32, %c0_i32_0 : i32, i32
  }
  func.func @transform_4(%arg0: i32) -> (i32, i32) {
    %c0_i32 = arith.constant 0 : i32
    %c0_i32_0 = arith.constant 0 : i32
    %c0_i32_1 = arith.constant 0 : i32
    return %c0_i32, %c0_i32_0 : i32, i32
  }
  func.func @transform_5(%arg0: i32) -> (i32, i32) {
    %c0_i32 = arith.constant 0 : i32
    %c0_i32_0 = arith.constant 0 : i32
    %c0_i32_1 = arith.constant 0 : i32
    return %c0_i32, %c0_i32_0 : i32, i32
  }
  func.func @transform_6(%arg0: i32) -> (i32, i32) {
    %c0_i32 = arith.constant 0 : i32
    %c0_i32_0 = arith.constant 0 : i32
    %c0_i32_1 = arith.constant 0 : i32
    return %c0_i32, %c0_i32_0 : i32, i32
  }
  func.func @transform_7(%arg0: i32) -> (i32, i32) {
    %c0_i32 = arith.constant 0 : i32
    %c0_i32_0 = arith.constant 0 : i32
    %c0_i32_1 = arith.constant 0 : i32
    return %c0_i32, %c0_i32_0 : i32, i32
  }
  func.func @transform_8(%arg0: i32) -> (i32, i32) {
    %c0_i32 = arith.constant 0 : i32
    %c0_i32_0 = arith.constant 0 : i32
    %c0_i32_1 = arith.constant 0 : i32
    return %c0_i32, %c0_i32_0 : i32, i32
  }
  func.func @transform_9(%arg0: i32) -> (i32, i32) {
    %c0_i32 = arith.constant 0 : i32
    %c0_i32_0 = arith.constant 0 : i32
    return %arg0, %c0_i32 : i32, i32
  }
}

</mosaic_0001>

<bundles_post_ra>
// kernel: tpu_custom_call.1
= control target key start
LH: loop header
LB: loop body
LE: loop exit
PB: predicated region body
PF: predicated region fallthrough
CT: control target
= control target key end

     0   :  { %14 = vsyncpa [#allocation3], 0  ;;  %s2622_s0 = inlined_call_operand.hbm [shape: bf16[16,384], index: 0, kind: input, shape index: {}]   ;;  %s2623_s1 = inlined_call_operand.hbm [shape: bf16[384,512], index: 1, kind: input, shape index: {}]   ;;  %s2624_s2 = inlined_call_operand.vmem [shape: f32[1,512], index: 2, kind: input, shape index: {}]   ;;  %s2625_s3 = inlined_call_operand.hbm [shape: bf16[512,256], index: 3, kind: input, shape index: {}]   ;;  %s2626_s4 = inlined_call_operand.vmem [shape: f32[1,256], index: 4, kind: input, shape index: {}]   ;;  %s2627_s5 = inlined_call_operand.hbm [shape: bf16[256,128], index: 5, kind: input, shape index: {}]   ;;  %s2628_s6 = inlined_call_operand.vmem [shape: f32[1,128], index: 6, kind: input, shape index: {}]   ;;  %s2629_s7 = inlined_call_operand.hbm [shape: bf16[128,128], index: 7, kind: input, shape index: {}]   ;;  %s2630_s8 = inlined_call_operand.vmem [shape: f32[1,128], index: 8, kind: input, shape index: {}]   ;;  %s2631_s9 = inlined_call_operand.hbm [shape: bf16[16,128], index: 9, kind: output, shape index: {}]  }
   0x1   :  { %15 = vsyncpa [#allocation6], 0 }
   0x2   :  { %16 = vsyncpa [#allocation9], 0 }
   0x3   :  { %17 = vsyncpa [#allocation4], 0  ;;  %s2436_s30 = smov [#allocation5]   ;;  %s2296_s13 = scalar_lea.hbm %s2623_s1, 12288 }
   0x4   :  { %s35_s10 = sshll.u32 %s2436_s30, 4  ;;  %p2297_p0 = scmp.ne.s32.totalorder %s2623_s1, %s2296_s13  ;;  %s36_s10 = int_to_ptr.vmem [resolvable:$true] %s35_s10 }
   0x5   :  { %p2300_p1 = scmp.lt.u32.totalorder %s2296_s13, %s2623_s1 }
   0x7   :  { %p2302_p2 = pnand %p2300_p1, %p2297_p0 }
   0x9   :  { %2305 = shalt.err (!%p2302_p2)
}
   0xa   :  { %s2306_s18 = scalar_lea.vmem %s36_s10, 12288  ;;  %p2311_p4 = scmp.lt.s32.totalorder %s36_s10, %s36_s10 }
   0xb   :  { %p2307_p3 = scmp.ne.s32.totalorder %s36_s10, %s2306_s18  ;;  %p2312_p5 = scmp.lt.s32.totalorder %s2306_s18, %s2306_s18 }
   0xd   :  { %p2313_p6 = por %p2312_p5, %p2311_p4 }
   0xf   :  { %p2314_p7 = pnand %p2313_p6, %p2307_p3 }
  0x11   :  { %2317 = shalt.err (!%p2314_p7)
}
  0x12   :  { %s2437_s19 = smov 256   ;;  %s2438_s20 = smov 16  }
  0x13   :  { %41 = dma.hbm_to_vmem [thread:$0]  %s2623_s1, 12288, %s36_s10, [#allocation6], %s2437_s19, %s2437_s19, %s2438_s20  }
  0x14   :  { %s2439_s23 = smov [#allocation8]   ;;  %s2318_s27 = scalar_lea.hbm %s2627_s5, 2048 }
  0x15   :  { %s63_s24 = sshll.u32 %s2439_s23, 4  ;;  %p2319_p8 = scmp.ne.s32.totalorder %s2627_s5, %s2318_s27  ;;  %s64_s24 = int_to_ptr.vmem [resolvable:$true] %s63_s24 }
  0x16   :  { %p2322_p9 = scmp.lt.u32.totalorder %s2318_s27, %s2627_s5 }
  0x18   :  { %p2324_p10 = pnand %p2322_p9, %p2319_p8 }
  0x1a   :  { %2327 = shalt.err (!%p2324_p10)
}
  0x1b   :  { %s2328_s12 = scalar_lea.vmem %s64_s24, 2048  ;;  %p2333_p12 = scmp.lt.s32.totalorder %s64_s24, %s64_s24 }
  0x1c   :  { %p2329_p11 = scmp.ne.s32.totalorder %s64_s24, %s2328_s12  ;;  %p2334_p13 = scmp.lt.s32.totalorder %s2328_s12, %s2328_s12 }
  0x1e   :  { %p2335_p0 = por %p2334_p13, %p2333_p12 }
  0x20   :  { %p2336_p1 = pnand %p2335_p0, %p2329_p11 }
  0x22   :  { %2339 = shalt.err (!%p2336_p1)
}
  0x23   :  { %s2440_s1 = smov 64   ;;  %s2441_s10 = smov 4  }
  0x24   :  { %69 = dma.hbm_to_vmem [thread:$0]  %s2627_s5, 2048, %s64_s24, [#allocation9], %s2440_s1, %s2440_s1, %s2441_s10  }
  0x25   :  { %s2442_s15 = smov [#allocation2]   ;;  %s2340_s19 = scalar_lea.hbm %s2622_s0, 384 }
  0x26   :  { %s23_s16 = sshll.u32 %s2442_s15, 4  ;;  %p2341_p2 = scmp.ne.s32.totalorder %s2622_s0, %s2340_s19  ;;  %s24_s16 = int_to_ptr.vmem [resolvable:$true] %s23_s16 }
  0x27   :  { %p2344_p3 = scmp.lt.u32.totalorder %s2340_s19, %s2622_s0 }
  0x29   :  { %p2346_p4 = pnand %p2344_p3, %p2341_p2 }
  0x2b   :  { %2349 = shalt.err (!%p2346_p4)
}
  0x2c   :  { %s2350_s25 = scalar_lea.vmem %s24_s16, 384  ;;  %p2355_p6 = scmp.lt.s32.totalorder %s24_s16, %s24_s16 }
  0x2d   :  { %p2351_p5 = scmp.ne.s32.totalorder %s24_s16, %s2350_s25  ;;  %p2356_p7 = scmp.lt.s32.totalorder %s2350_s25, %s2350_s25 }
  0x2f   :  { %p2357_p8 = por %p2356_p7, %p2355_p6 }
  0x31   :  { %p2358_p9 = pnand %p2357_p8, %p2351_p5 }
  0x33   :  { %2361 = shalt.err (!%p2358_p9)
}
  0x34   :  { %s2443_s5 = smov 192   ;;  %s2444_s24 = smov 12  }
  0x35   :  { %29 = dma.hbm_to_vmem [thread:$0]  %s2622_s0, 384, %s24_s16, [#allocation3], %s2443_s5, %s2443_s5, %s2444_s24  }
  0x36   :  { %s2445_s28 = smov [#allocation7]   ;;  %s2362_s12 = scalar_lea.hbm %s2625_s3, 8192 }
  0x37   :  { %s49_s29 = sshll.u32 %s2445_s28, 4  ;;  %p2363_p10 = scmp.ne.s32.totalorder %s2625_s3, %s2362_s12  ;;  %s50_s29 = int_to_ptr.vmem [resolvable:$true] %s49_s29 }
  0x38   :  { %p2366_p11 = scmp.lt.u32.totalorder %s2362_s12, %s2625_s3 }
  0x3a   :  { %p2368_p12 = pnand %p2366_p11, %p2363_p10 }
  0x3c   :  { %2371 = shalt.err (!%p2368_p12)
}
  0x3d   :  { %s2372_s18 = scalar_lea.vmem %s50_s29, 8192  ;;  %p2377_p0 = scmp.lt.s32.totalorder %s50_s29, %s50_s29 }
  0x3e   :  { %p2373_p13 = scmp.ne.s32.totalorder %s50_s29, %s2372_s18  ;;  %p2378_p1 = scmp.lt.s32.totalorder %s2372_s18, %s2372_s18 }
  0x40   :  { %p2379_p2 = por %p2378_p1, %p2377_p0 }
  0x42   :  { %p2380_p3 = pnand %p2379_p2, %p2373_p13 }
  0x44   :  { %2383 = shalt.err (!%p2380_p3)
}
  0x45   :  { %s2446_s0 = smov 128   ;;  %s2447_s16 = smov 8  }
  0x46   :  { %55 = dma.hbm_to_vmem [thread:$0]  %s2625_s3, 8192, %s50_s29, [#allocation6], %s2446_s0, %s2446_s0, %s2447_s16  }
  0x47   :  { %s2448_s21 = smov [#allocation10]   ;;  %s2384_s5 = scalar_lea.hbm %s2629_s7, 1024 }
  0x48   :  { %s77_s22 = sshll.u32 %s2448_s21, 4  ;;  %p2385_p4 = scmp.ne.s32.totalorder %s2629_s7, %s2384_s5  ;;  %s78_s22 = int_to_ptr.vmem [resolvable:$true] %s77_s22 }
  0x49   :  { %p2388_p5 = scmp.lt.u32.totalorder %s2384_s5, %s2629_s7 }
  0x4b   :  { %p2390_p6 = pnand %p2388_p5, %p2385_p4 }
  0x4d   :  { %2393 = shalt.err (!%p2390_p6)
}
  0x4e   :  { %s2394_s30 = scalar_lea.vmem %s78_s22, 1024  ;;  %p2399_p8 = scmp.lt.s32.totalorder %s78_s22, %s78_s22 }
  0x4f   :  { %p2395_p7 = scmp.ne.s32.totalorder %s78_s22, %s2394_s30  ;;  %p2400_p9 = scmp.lt.s32.totalorder %s2394_s30, %s2394_s30 }
  0x51   :  { %p2401_p10 = por %p2400_p9, %p2399_p8 }
  0x53   :  { %p2402_p11 = pnand %p2401_p10, %p2395_p7 }
  0x55   :  { %2405 = shalt.err (!%p2402_p11)
}
  0x56   :  { %83 = dma.hbm_to_vmem [thread:$0]  %s2629_s7, 1024, %s78_s22, [#allocation9], %s2440_s1, %s2440_s1, %s2441_s10  }
  0x57   :  { %2428 = dma.done.wait [#allocation3], 384  }
  0x58   :  { %2429 = vsyncadd [#allocation3], 4294966912 }
  0x59   :  { %2430 = dma.done.wait [#allocation6], 20480  }
  0x5a   :  { %2431 = vsyncadd [#allocation6], 4294946816 }
  0x5b   :  { %2432 = dma.done.wait [#allocation9], 3072  }
  0x5c   :  { %2433 = vsyncadd [#allocation9], 4294964224  ;;  %v2449_v0 = vmov 0   ;;  %v2020_v1 = vld [vmem:[#allocation5 + $0x4] ss:$16 sps:$4 sm:$0xff]   ;;  %vm2451_vm0 = vmmov 0  }
  0x5d   :  { %795 = vmatprep.mubr.bf16.mxu1 %v2449_v0  ;;  %v2022_v2 = vld [vmem:[#allocation5 + $0x204] ss:$16 sps:$4 sm:$0xff]   ;;  %720 = vmatprep.subr.bf16.mxu0 %v2020_v1  ;;  %v2024_v3 = vld [vmem:[#allocation5] ss:$16 sps:$4 sm:$0xff]   ;;  %v2073_v34 = vld [vmem:[#allocation5 + $0xc] ss:$16 sps:$4 sm:$0xff]  }
  0x5e   :  { %v2025_v4 = vld [vmem:[#allocation5 + $0x200] ss:$16 sps:$4 sm:$0xff]   ;;  %763 = vmatprep.subr.bf16.mxu1 %v2022_v2  ;;  %v2026_v5 = vld [vmem:[#allocation5 + $0x24] ss:$16 sps:$4 sm:$0xff]   ;;  %721 = vmatpush1.bf16.msra.mxu0 %v2024_v3  ;;  %v2071_v36 = vld [vmem:[#allocation5 + $0x8] ss:$16 sps:$4 sm:$0xff]  }
  0x5f   :  { %764 = vmatpush1.bf16.msra.mxu1 %v2025_v4  ;;  %v2028_v6 = vld [vmem:[#allocation5 + $0x224] ss:$16 sps:$4 sm:$0xff]   ;;  %v2030_v7 = vld [vmem:[#allocation5 + $0x20] ss:$16 sps:$4 sm:$0xff]   ;;  %722 = vmatprep.subr.bf16.mxu0 %v2026_v5  ;;  %v2079_v39 = vld [vmem:[#allocation5 + $0x2c] ss:$16 sps:$4 sm:$0xff]  }
  0x60   :  { %v2031_v8 = vld [vmem:[#allocation5 + $0x220] ss:$16 sps:$4 sm:$0xff]   ;;  %765 = vmatprep.subr.bf16.mxu1 %v2028_v6  ;;  %v2032_v9 = vld [vmem:[#allocation5 + $0x44] ss:$16 sps:$4 sm:$0xff]   ;;  %v2077_v40 = vld [vmem:[#allocation5 + $0x28] ss:$16 sps:$4 sm:$0xff]  }
  0x61   :  { %v2034_v10 = vld [vmem:[#allocation5 + $0x244] ss:$16 sps:$4 sm:$0xff]   ;;  %v2036_v11 = vld [vmem:[#allocation5 + $0x40] ss:$16 sps:$4 sm:$0xff]   ;;  %v2085_v43 = vld [vmem:[#allocation5 + $0x4c] ss:$16 sps:$4 sm:$0xff]  }
  0x62   :  { %v2037_v12 = vld [vmem:[#allocation5 + $0x240] ss:$16 sps:$4 sm:$0xff]   ;;  %723 = vmatpush1.bf16.msra.mxu0 %v2030_v7  ;;  %v2038_v13 = vld [vmem:[#allocation5 + $0x64] ss:$16 sps:$4 sm:$0xff]   ;;  %v2083_v44 = vld [vmem:[#allocation5 + $0x48] ss:$16 sps:$4 sm:$0xff]  }
  0x63   :  { %766 = vmatpush1.bf16.msra.mxu1 %v2031_v8  ;;  %724 = vmatprep.subr.bf16.mxu0 %v2032_v9  ;;  %v2040_v14 = vld [vmem:[#allocation5 + $0x264] ss:$16 sps:$4 sm:$0xff]   ;;  %v2042_v15 = vld [vmem:[#allocation5 + $0x60] ss:$16 sps:$4 sm:$0xff]   ;;  %v2091_v47 = vld [vmem:[#allocation5 + $0x6c] ss:$16 sps:$4 sm:$0xff]  }
  0x64   :  { %767 = vmatprep.subr.bf16.mxu1 %v2034_v10  ;;  %v2043_v16 = vld [vmem:[#allocation5 + $0x260] ss:$16 sps:$4 sm:$0xff]   ;;  %v2044_v17 = vld [vmem:[#allocation5 + $0x84] ss:$16 sps:$4 sm:$0xff]   ;;  %v2089_v48 = vld [vmem:[#allocation5 + $0x68] ss:$16 sps:$4 sm:$0xff]  }
  0x65   :  { %v2046_v18 = vld [vmem:[#allocation5 + $0x284] ss:$16 sps:$4 sm:$0xff]   ;;  %v2048_v19 = vld [vmem:[#allocation5 + $0x80] ss:$16 sps:$4 sm:$0xff]   ;;  %v2119_v51 = vld [vmem:[#allocation2 + $0x4] ss:$12 sps:$4 sm:$0xff]  }
  0x66   :  { %725 = vmatpush1.bf16.msra.mxu0 %v2036_v11  ;;  %v2049_v20 = vld [vmem:[#allocation5 + $0x280] ss:$16 sps:$4 sm:$0xff]   ;;  %v2050_v21 = vld [vmem:[#allocation5 + $0xa4] ss:$16 sps:$4 sm:$0xff]   ;;  %v2097_v52 = vld [vmem:[#allocation5 + $0x8c] ss:$16 sps:$4 sm:$0xff]   ;;  %752 = vmatprep.mubr.bf16.mxu0 %v2119_v51 }
  0x67   :  { %768 = vmatpush1.bf16.msra.mxu1 %v2037_v12  ;;  %726 = vmatprep.subr.bf16.mxu0 %v2038_v13  ;;  %v2052_v22 = vld [vmem:[#allocation5 + $0x2a4] ss:$16 sps:$4 sm:$0xff]   ;;  %v2054_v23 = vld [vmem:[#allocation5 + $0xa0] ss:$16 sps:$4 sm:$0xff]   ;;  %v2095_v53 = vld [vmem:[#allocation5 + $0x88] ss:$16 sps:$4 sm:$0xff]  }
  0x68   :  { %769 = vmatprep.subr.bf16.mxu1 %v2040_v14  ;;  %v2055_v24 = vld [vmem:[#allocation5 + $0x2a0] ss:$16 sps:$4 sm:$0xff]   ;;  %v2056_v25 = vld [vmem:[#allocation5 + $0xc4] ss:$16 sps:$4 sm:$0xff]   ;;  %v2103_v56 = vld [vmem:[#allocation5 + $0xac] ss:$16 sps:$4 sm:$0xff]  }
  0x69   :  { %v2058_v26 = vld [vmem:[#allocation5 + $0x2c4] ss:$16 sps:$4 sm:$0xff]   ;;  %v2060_v27 = vld [vmem:[#allocation5 + $0xc0] ss:$16 sps:$4 sm:$0xff]   ;;  %v2101_v57 = vld [vmem:[#allocation5 + $0xa8] ss:$16 sps:$4 sm:$0xff]  }
  0x6a   :  { %727 = vmatpush1.bf16.msra.mxu0 %v2042_v15  ;;  %v2061_v28 = vld [vmem:[#allocation5 + $0x2c0] ss:$16 sps:$4 sm:$0xff]   ;;  %v2062_v29 = vld [vmem:[#allocation5 + $0xe4] ss:$16 sps:$4 sm:$0xff]   ;;  %v2109_v60 = vld [vmem:[#allocation5 + $0xcc] ss:$16 sps:$4 sm:$0xff]  }
  0x6b   :  { %770 = vmatpush1.bf16.msra.mxu1 %v2043_v16  ;;  %728 = vmatprep.subr.bf16.mxu0 %v2044_v17  ;;  %v2064_v30 = vld [vmem:[#allocation5 + $0x2e4] ss:$16 sps:$4 sm:$0xff]   ;;  %v2066_v31 = vld [vmem:[#allocation5 + $0xe0] ss:$16 sps:$4 sm:$0xff]   ;;  %v2107_v61 = vld [vmem:[#allocation5 + $0xc8] ss:$16 sps:$4 sm:$0xff]  }
  0x6c   :  { %771 = vmatprep.subr.bf16.mxu1 %v2046_v18  ;;  %v2067_v32 = vld [vmem:[#allocation5 + $0x2e0] ss:$16 sps:$4 sm:$0xff]   ;;  %v2068_v33 = vld [vmem:[#allocation5 + $0x104] ss:$16 sps:$4 sm:$0xff]   ;;  %v2115_v1 = vld [vmem:[#allocation5 + $0xec] ss:$16 sps:$4 sm:$0xff]  }
  0x6d   :  { %v2570_v35 = vld [vmem:[#allocation2 + $0x8] ss:$12 sps:$4 sm:$0xff]   ;;  %v2075_v38 = vld [vmem:[#allocation5 + $0x124] ss:$16 sps:$4 sm:$0xff]   ;;  %v2113_v2 = vld [vmem:[#allocation5 + $0xe8] ss:$16 sps:$4 sm:$0xff]  }
  0x6e   :  { %729 = vmatpush1.bf16.msra.mxu0 %v2048_v19  ;;  %v2074_v37 = vld [vmem:[#allocation5 + $0x100] ss:$16 sps:$4 sm:$0xff]   ;;  %v2081_v42 = vld [vmem:[#allocation5 + $0x144] ss:$16 sps:$4 sm:$0xff]   ;;  %v2122_v4 = vld [vmem:[#allocation5 + $0x10c] ss:$16 sps:$4 sm:$0xff]  }
  0x6f   :  { %772 = vmatpush1.bf16.msra.mxu1 %v2049_v20  ;;  %730 = vmatprep.subr.bf16.mxu0 %v2050_v21  ;;  %v2080_v41 = vld [vmem:[#allocation5 + $0x120] ss:$16 sps:$4 sm:$0xff]   ;;  %v2087_v46 = vld [vmem:[#allocation5 + $0x164] ss:$16 sps:$4 sm:$0xff]   ;;  %v2120_v6 = vld [vmem:[#allocation5 + $0x108] ss:$16 sps:$4 sm:$0xff]  }
  0x70   :  { %773 = vmatprep.subr.bf16.mxu1 %v2052_v22  ;;  %v2086_v45 = vld [vmem:[#allocation5 + $0x140] ss:$16 sps:$4 sm:$0xff]   ;;  %v2093_v50 = vld [vmem:[#allocation5 + $0x184] ss:$16 sps:$4 sm:$0xff]   ;;  %v2125_v7 = vld [vmem:[#allocation5 + $0x12c] ss:$16 sps:$4 sm:$0xff]  }
  0x71   :  { %v2092_v49 = vld [vmem:[#allocation5 + $0x160] ss:$16 sps:$4 sm:$0xff]   ;;  %v2099_v55 = vld [vmem:[#allocation5 + $0x1a4] ss:$16 sps:$4 sm:$0xff]   ;;  %v2123_v10 = vld [vmem:[#allocation5 + $0x128] ss:$16 sps:$4 sm:$0xff]  }
  0x72   :  { %731 = vmatpush1.bf16.msra.mxu0 %v2054_v23  ;;  %v2098_v54 = vld [vmem:[#allocation5 + $0x180] ss:$16 sps:$4 sm:$0xff]   ;;  %v2105_v59 = vld [vmem:[#allocation5 + $0x1c4] ss:$16 sps:$4 sm:$0xff]   ;;  %v2128_v12 = vld [vmem:[#allocation5 + $0x14c] ss:$16 sps:$4 sm:$0xff]  }
  0x73   :  { %774 = vmatpush1.bf16.msra.mxu1 %v2055_v24  ;;  %732 = vmatprep.subr.bf16.mxu0 %v2056_v25  ;;  %v2104_v58 = vld [vmem:[#allocation5 + $0x1a0] ss:$16 sps:$4 sm:$0xff]   ;;  %v2111_v63 = vld [vmem:[#allocation5 + $0x1e4] ss:$16 sps:$4 sm:$0xff]   ;;  %v2126_v14 = vld [vmem:[#allocation5 + $0x148] ss:$16 sps:$4 sm:$0xff]  }
  0x74   :  { %775 = vmatprep.subr.bf16.mxu1 %v2058_v26  ;;  %v2110_v62 = vld [vmem:[#allocation5 + $0x1c0] ss:$16 sps:$4 sm:$0xff]   ;;  %v2117_v5 = vld [vmem:[#allocation2] ss:$12 sps:$4 sm:$0xff]   ;;  %v2170_v9 = vld [vmem:[#allocation7 + $0x4] ss:$8 sps:$4 sm:$0xff]  }
  0x75   :  { %v2116_v3 = vld [vmem:[#allocation5 + $0x1e0] ss:$16 sps:$4 sm:$0xff]   ;;  %v2173_v11 = vld [vmem:[#allocation7 + $0x14] ss:$8 sps:$4 sm:$0xff]   ;;  %v2176_v15 = vld [vmem:[#allocation7 + $0x24] ss:$8 sps:$4 sm:$0xff]  }
  0x76   :  { %733 = vmatpush1.bf16.msra.mxu0 %v2060_v27  ;;  %v2168_v8 = vld [vmem:[#allocation7] ss:$8 sps:$4 sm:$0xff]   ;;  %v2171_v13 = vld [vmem:[#allocation7 + $0x10] ss:$8 sps:$4 sm:$0xff]   ;;  %v2131_v16 = vld [vmem:[#allocation5 + $0x16c] ss:$16 sps:$4 sm:$0xff]  }
  0x77   :  { %776 = vmatpush1.bf16.msra.mxu1 %v2061_v28  ;;  %734 = vmatprep.subr.bf16.mxu0 %v2062_v29  ;;  %v2174_v17 = vld [vmem:[#allocation7 + $0x20] ss:$8 sps:$4 sm:$0xff]   ;;  %v2179_v18 = vld [vmem:[#allocation7 + $0x34] ss:$8 sps:$4 sm:$0xff]   ;;  %v2177_v21 = vld [vmem:[#allocation7 + $0x30] ss:$8 sps:$4 sm:$0xff]  }
  0x78   :  { %777 = vmatprep.subr.bf16.mxu1 %v2064_v30  ;;  %v2129_v19 = vld [vmem:[#allocation5 + $0x168] ss:$16 sps:$4 sm:$0xff]   ;;  %v2134_v20 = vld [vmem:[#allocation5 + $0x18c] ss:$16 sps:$4 sm:$0xff]  }
  0x79   :  { %v2182_v22 = vld [vmem:[#allocation7 + $0x44] ss:$8 sps:$4 sm:$0xff]   ;;  %v2132_v23 = vld [vmem:[#allocation5 + $0x188] ss:$16 sps:$4 sm:$0xff]  }
  0x7a   :  { %735 = vmatpush1.bf16.msra.mxu0 %v2066_v31  ;;  %v2137_v24 = vld [vmem:[#allocation5 + $0x1ac] ss:$16 sps:$4 sm:$0xff]   ;;  %v2180_v25 = vld [vmem:[#allocation7 + $0x40] ss:$8 sps:$4 sm:$0xff]  }
  0x7b   :  { %778 = vmatpush1.bf16.msra.mxu1 %v2067_v32  ;;  %736 = vmatprep.subr.bf16.mxu0 %v2068_v33  ;;  %v2135_v26 = vld [vmem:[#allocation5 + $0x1a8] ss:$16 sps:$4 sm:$0xff]   ;;  %v2140_v27 = vld [vmem:[#allocation5 + $0x1cc] ss:$16 sps:$4 sm:$0xff]  }
  0x7c   :  { %806 = vmatprep.subr.bf16.mxu1 %v2073_v34  ;;  %v2138_v28 = vld [vmem:[#allocation5 + $0x1c8] ss:$16 sps:$4 sm:$0xff]   ;;  %v2143_v29 = vld [vmem:[#allocation5 + $0x1ec] ss:$16 sps:$4 sm:$0xff]  }
  0x7d   :  { %v2141_v30 = vld [vmem:[#allocation5 + $0x1e8] ss:$16 sps:$4 sm:$0xff]   ;;  %v2146_v31 = vld [vmem:[#allocation5 + $0x20c] ss:$16 sps:$4 sm:$0xff]  }
  0x7e   :  { %796 = vmatmul.mubr.bf16.vlgmr.msra.gmra.mrb[0].mxu1 %v2570_v35  ;;  %737 = vmatpush1.bf16.msra.mxu0 %v2074_v37  ;;  %v2144_v32 = vld [vmem:[#allocation5 + $0x208] ss:$16 sps:$4 sm:$0xff]   ;;  %v2149_v33 = vld [vmem:[#allocation5 + $0x22c] ss:$16 sps:$4 sm:$0xff]  }
  0x7f   :  { %807 = vmatpush1.bf16.msra.mxu1 %v2071_v36  ;;  %738 = vmatprep.subr.bf16.mxu0 %v2075_v38  ;;  %v2147_v34 = vld [vmem:[#allocation5 + $0x228] ss:$16 sps:$4 sm:$0xff]   ;;  %v2152_v36 = vld [vmem:[#allocation5 + $0x24c] ss:$16 sps:$4 sm:$0xff]  }
  0x80   :  { %808 = vmatprep.subr.bf16.mxu1 %v2079_v39  ;;  %838 = vmatprep.mubr.bf16.mxu1 %v2119_v51  ;;  %v2150_v37 = vld [vmem:[#allocation5 + $0x248] ss:$16 sps:$4 sm:$0xff]   ;;  %v2155_v38 = vld [vmem:[#allocation5 + $0x26c] ss:$16 sps:$4 sm:$0xff]  }
  0x81   :  { %v2153_v39 = vld [vmem:[#allocation5 + $0x268] ss:$16 sps:$4 sm:$0xff]  }
  0x82   :  { %739 = vmatpush1.bf16.msra.mxu0 %v2080_v41  ;;  %v2156_v41 = vld [vmem:[#allocation5 + $0x288] ss:$16 sps:$4 sm:$0xff]  }
  0x83   :  { %809 = vmatpush1.bf16.msra.mxu1 %v2077_v40  ;;  %740 = vmatprep.subr.bf16.mxu0 %v2081_v42  ;;  %v2158_v40 = vld [vmem:[#allocation5 + $0x28c] ss:$16 sps:$4 sm:$0xff]   ;;  %v2189_v51 = vld [vmem:[#allocation7 + $0x70] ss:$8 sps:$4 sm:$0xff]  }
  0x84   :  { %810 = vmatprep.subr.bf16.mxu1 %v2085_v43  ;;  %v2161_v42 = vld [vmem:[#allocation5 + $0x2ac] ss:$16 sps:$4 sm:$0xff]   ;;  %v2159_v43 = vld [vmem:[#allocation5 + $0x2a8] ss:$16 sps:$4 sm:$0xff]  }
  0x86   :  { %741 = vmatpush1.bf16.msra.mxu0 %v2086_v45  ;;  %v2164_v45 = vld [vmem:[#allocation5 + $0x2cc] ss:$16 sps:$4 sm:$0xff]  }
  0x87   :  { %811 = vmatpush1.bf16.msra.mxu1 %v2083_v44  ;;  %742 = vmatprep.subr.bf16.mxu0 %v2087_v46  ;;  %v2185_v44 = vld [vmem:[#allocation7 + $0x54] ss:$8 sps:$4 sm:$0xff]   ;;  %v2183_v46 = vld [vmem:[#allocation7 + $0x50] ss:$8 sps:$4 sm:$0xff]  }
  0x88   :  { %812 = vmatprep.subr.bf16.mxu1 %v2091_v47  ;;  %v2188_v47 = vld [vmem:[#allocation7 + $0x64] ss:$8 sps:$4 sm:$0xff]  }
  0x8a   :  { %743 = vmatpush1.bf16.msra.mxu0 %v2092_v49  ;;  %v2186_v49 = vld [vmem:[#allocation7 + $0x60] ss:$8 sps:$4 sm:$0xff]  }
  0x8b   :  { %813 = vmatpush1.bf16.msra.mxu1 %v2089_v48  ;;  %744 = vmatprep.subr.bf16.mxu0 %v2093_v50  ;;  %v2167_v48 = vld [vmem:[#allocation5 + $0x2ec] ss:$16 sps:$4 sm:$0xff]  }
  0x8c   :  { %814 = vmatprep.subr.bf16.mxu1 %v2097_v52  ;;  %v2191_v50 = vld [vmem:[#allocation7 + $0x74] ss:$8 sps:$4 sm:$0xff]   ;;  %v2165_v52 = vld [vmem:[#allocation5 + $0x2e8] ss:$16 sps:$4 sm:$0xff]  }
  0x8e   :  { %745 = vmatpush1.bf16.msra.mxu0 %v2098_v54  ;;  %v2192_v54 = vld [vmem:[#allocation7 + $0x80] ss:$8 sps:$4 sm:$0xff]  }
  0x8f   :  { %815 = vmatpush1.bf16.msra.mxu1 %v2095_v53  ;;  %746 = vmatprep.subr.bf16.mxu0 %v2099_v55  ;;  %v2194_v53 = vld [vmem:[#allocation7 + $0x84] ss:$8 sps:$4 sm:$0xff]   ;;  %v2197_v55 = vld [vmem:[#allocation7 + $0x94] ss:$8 sps:$4 sm:$0xff]  }
  0x90   :  { %816 = vmatprep.subr.bf16.mxu1 %v2103_v56  ;;  %v2195_v56 = vld [vmem:[#allocation7 + $0x90] ss:$8 sps:$4 sm:$0xff]  }
  0x92   :  { %747 = vmatpush1.bf16.msra.mxu0 %v2104_v58  ;;  %v2198_v58 = vld [vmem:[#allocation7 + $0xa0] ss:$8 sps:$4 sm:$0xff]  }
  0x93   :  { %817 = vmatpush1.bf16.msra.mxu1 %v2101_v57  ;;  %748 = vmatprep.subr.bf16.mxu0 %v2105_v59  ;;  %v2200_v57 = vld [vmem:[#allocation7 + $0xa4] ss:$8 sps:$4 sm:$0xff]   ;;  %v2203_v59 = vld [vmem:[#allocation7 + $0xb4] ss:$8 sps:$4 sm:$0xff]  }
  0x94   :  { %818 = vmatprep.subr.bf16.mxu1 %v2109_v60  ;;  %v2201_v60 = vld [vmem:[#allocation7 + $0xb0] ss:$8 sps:$4 sm:$0xff]  }
  0x96   :  { %749 = vmatpush1.bf16.msra.mxu0 %v2110_v62  ;;  %v2204_v62 = vld [vmem:[#allocation7 + $0xc0] ss:$8 sps:$4 sm:$0xff]  }
  0x97   :  { %819 = vmatpush1.bf16.msra.mxu1 %v2107_v61  ;;  %750 = vmatprep.subr.bf16.mxu0 %v2111_v63  ;;  %v2206_v61 = vld [vmem:[#allocation7 + $0xc4] ss:$8 sps:$4 sm:$0xff]   ;;  %v2209_v63 = vld [vmem:[#allocation7 + $0xd4] ss:$8 sps:$4 sm:$0xff]  }
  0x98   :  { %820 = vmatprep.subr.bf16.mxu1 %v2115_v1  ;;  %v2207_v1 = vld [vmem:[#allocation7 + $0xd0] ss:$8 sps:$4 sm:$0xff]  }
  0x9a   :  { %751 = vmatpush1.bf16.msra.mxu0 %v2116_v3  ;;  %v2215_v3 = vld [vmem:[#allocation7 + $0xf4] ss:$8 sps:$4 sm:$0xff]  }
  0x9b   :  { %821 = vmatpush1.bf16.msra.mxu1 %v2113_v2  ;;  %1300 = vmatprep.subr.bf16.mxu0 %v2170_v9  ;;  %v2210_v2 = vld [vmem:[#allocation7 + $0xe0] ss:$8 sps:$4 sm:$0xff]  }
  0x9c   :  { %822 = vmatprep.subr.bf16.mxu1 %v2122_v4  ;;  %v2213_v4 = vld [vmem:[#allocation7 + $0xf0] ss:$8 sps:$4 sm:$0xff]   ;;  %v2267_v9 = vld [vmem:[#allocation8 + $0x8] sm:$0xff]  }
  0x9d   :  { %753 = vmatmul.mubr.bf16.vlgmr.msra.gmra.mrb[0].mxu0 %v2117_v5 }
  0x9e   :  { %1301 = vmatpush1.bf16.msra.mxu0 %v2168_v8  ;;  %v2266_v8 = vld [vmem:[#allocation8 + $0x48] sm:$0xff]  }
  0x9f   :  { %823 = vmatpush1.bf16.msra.mxu1 %v2120_v6  ;;  %1302 = vmatprep.subr.bf16.mxu0 %v2173_v11  ;;  %v2264_v6 = vld [vmem:[#allocation8 + $0x40] sm:$0xff]   ;;  %v2269_v11 = vld [vmem:[#allocation8 + $0x10] sm:$0xff]  }
  0xa0   :  { %824 = vmatprep.subr.bf16.mxu1 %v2125_v7  ;;  %v2265_v7 = vld [vmem:[#allocation8] sm:$0xff]  }
  0xa2   :  { %1303 = vmatpush1.bf16.msra.mxu0 %v2171_v13  ;;  %v2271_v13 = vld [vmem:[#allocation8 + $0x18] sm:$0xff]  }
  0xa3   :  { %825 = vmatpush1.bf16.msra.mxu1 %v2123_v10  ;;  %1304 = vmatprep.subr.bf16.mxu0 %v2176_v15  ;;  %v2268_v10 = vld [vmem:[#allocation8 + $0x50] sm:$0xff]   ;;  %v2273_v15 = vld [vmem:[#allocation8 + $0x20] sm:$0xff]  }
  0xa4   :  { %826 = vmatprep.subr.bf16.mxu1 %v2128_v12  ;;  %v2270_v12 = vld [vmem:[#allocation8 + $0x58] sm:$0xff]  }
  0xa6   :  { %1305 = vmatpush1.bf16.msra.mxu0 %v2174_v17 }
  0xa7   :  { %827 = vmatpush1.bf16.msra.mxu1 %v2126_v14  ;;  %1306 = vmatprep.subr.bf16.mxu0 %v2179_v18  ;;  %v2272_v14 = vld [vmem:[#allocation8 + $0x60] sm:$0xff]  }
  0xa8   :  { %828 = vmatprep.subr.bf16.mxu1 %v2131_v16  ;;  %v2274_v16 = vld [vmem:[#allocation8 + $0x68] sm:$0xff]  }
  0xaa   :  { %1307 = vmatpush1.bf16.msra.mxu0 %v2177_v21  ;;  %v204_v21 = vlaneseq }
  0xab   :  { %829 = vmatpush1.bf16.msra.mxu1 %v2129_v19  ;;  %1308 = vmatprep.subr.bf16.mxu0 %v2182_v22 }
  0xac   :  { %830 = vmatprep.subr.bf16.mxu1 %v2134_v20  ;;  %v2575_v22 = vshrl.u32 %v204_v21, 7 }
  0xae   :  { %1309 = vmatpush1.bf16.msra.mxu0 %v2180_v25  ;;  %v210_v25 = vsub.s32 1, %v2575_v22 }
  0xaf   :  { %831 = vmatpush1.bf16.msra.mxu1 %v2132_v23  ;;  %1310 = vmatprep.subr.bf16.mxu0 %v2185_v44  ;;  %v206_v23 = vsub.s32 0, %v2575_v22 }
  0xb0   :  { %832 = vmatprep.subr.bf16.mxu1 %v2137_v24  ;;  %v2581_v24 = vld [vmem:[%s2624_s2] sm:$0xf] }
  0xb2   :  { %1311 = vmatpush1.bf16.msra.mxu0 %v2183_v46 }
  0xb3   :  { %833 = vmatpush1.bf16.msra.mxu1 %v2135_v26  ;;  %1312 = vmatprep.subr.bf16.mxu0 %v2188_v47  ;;  %v207_v26 = vrot.slane %v2581_v24, %v206_v23  ;;  %v2221_v47 = vld [vmem:[#allocation7 + $0x114] ss:$8 sps:$4 sm:$0xff]  }
  0xb4   :  { %834 = vmatprep.subr.bf16.mxu1 %v2140_v27  ;;  %v211_v27 = vrot.slane %v2581_v24, %v210_v25 }
  0xb6   :  { %1313 = vmatpush1.bf16.msra.mxu0 %v2186_v49  ;;  %v2224_v49 = vld [vmem:[#allocation7 + $0x124] ss:$8 sps:$4 sm:$0xff]  }
  0xb7   :  { %835 = vmatpush1.bf16.msra.mxu1 %v2138_v28  ;;  %1314 = vmatprep.subr.bf16.mxu0 %v2191_v50  ;;  %v2222_v50 = vld [vmem:[#allocation7 + $0x120] ss:$8 sps:$4 sm:$0xff]  }
  0xb8   :  { %836 = vmatprep.subr.bf16.mxu1 %v2143_v29 }
  0xba   :  { %1315 = vmatpush1.bf16.msra.mxu0 %v2189_v51  ;;  %v2227_v51 = vld [vmem:[#allocation7 + $0x134] ss:$8 sps:$4 sm:$0xff]  }
  0xbb   :  { %837 = vmatpush1.bf16.msra.mxu1 %v2141_v30  ;;  %1316 = vmatprep.subr.bf16.mxu0 %v2194_v53  ;;  %v2230_v53 = vld [vmem:[#allocation7 + $0x144] ss:$8 sps:$4 sm:$0xff]  }
  0xbc   :  { %849 = vmatprep.subr.bf16.mxu1 %v2146_v31 }
  0xbe   :  { %839 = vmatmul.mubr.bf16.vlgmr.msra.gmra.mrb[4].mxu1 %v2117_v5  ;;  %1317 = vmatpush1.bf16.msra.mxu0 %v2192_v54  ;;  %v2218_v5 = vld [vmem:[#allocation7 + $0x104] ss:$8 sps:$4 sm:$0xff]   ;;  %v2228_v54 = vld [vmem:[#allocation7 + $0x140] ss:$8 sps:$4 sm:$0xff]  }
  0xbf   :  { %850 = vmatpush1.bf16.msra.mxu1 %v2144_v32  ;;  %881 = vmatprep.mubr.bf16.mxu1 %v2449_v0  ;;  %v2162_v0 = vld [vmem:[#allocation5 + $0x2c8] ss:$16 sps:$4 sm:$0xff]  }
  0xc0   :  { %851 = vmatprep.subr.bf16.mxu1 %v2149_v33  ;;  %1318 = vmatprep.subr.bf16.mxu0 %v2197_v55  ;;  %v2233_v55 = vld [vmem:[#allocation7 + $0x154] ss:$8 sps:$4 sm:$0xff]  }
  0xc2   :  { %1319 = vmatpush1.bf16.msra.mxu0 %v2195_v56  ;;  %v2231_v56 = vld [vmem:[#allocation7 + $0x150] ss:$8 sps:$4 sm:$0xff]  }
  0xc3   :  { %852 = vmatpush1.bf16.msra.mxu1 %v2147_v34  ;;  %1320 = vmatprep.subr.bf16.mxu0 %v2200_v57  ;;  %v2236_v57 = vld [vmem:[#allocation7 + $0x164] ss:$8 sps:$4 sm:$0xff]  }
  0xc4   :  { %853 = vmatprep.subr.bf16.mxu1 %v2152_v36 }
  0xc6   :  { %1321 = vmatpush1.bf16.msra.mxu0 %v2198_v58  ;;  %v2234_v58 = vld [vmem:[#allocation7 + $0x160] ss:$8 sps:$4 sm:$0xff]  }
  0xc7   :  { %854 = vmatpush1.bf16.msra.mxu1 %v2150_v37  ;;  %1322 = vmatprep.subr.bf16.mxu0 %v2203_v59  ;;  %v2239_v59 = vld [vmem:[#allocation7 + $0x174] ss:$8 sps:$4 sm:$0xff]  }
  0xc8   :  { %855 = vmatprep.subr.bf16.mxu1 %v2155_v38 }
  0xca   :  { %1323 = vmatpush1.bf16.msra.mxu0 %v2201_v60  ;;  %v2237_v60 = vld [vmem:[#allocation7 + $0x170] ss:$8 sps:$4 sm:$0xff]  }
  0xcb   :  { %856 = vmatpush1.bf16.msra.mxu1 %v2153_v39  ;;  %1324 = vmatprep.subr.bf16.mxu0 %v2206_v61  ;;  %v2242_v61 = vld [vmem:[#allocation7 + $0x184] ss:$8 sps:$4 sm:$0xff]  }
  0xcc   :  { %857 = vmatprep.subr.bf16.mxu1 %v2158_v40 }
  0xce   :  { %1325 = vmatpush1.bf16.msra.mxu0 %v2204_v62  ;;  %v2240_v62 = vld [vmem:[#allocation7 + $0x180] ss:$8 sps:$4 sm:$0xff]  }
  0xcf   :  { %858 = vmatpush1.bf16.msra.mxu1 %v2156_v41  ;;  %1326 = vmatprep.subr.bf16.mxu0 %v2209_v63  ;;  %v2245_v63 = vld [vmem:[#allocation7 + $0x194] ss:$8 sps:$4 sm:$0xff]  }
  0xd0   :  { %859 = vmatprep.subr.bf16.mxu1 %v2161_v42 }
  0xd2   :  { %1327 = vmatpush1.bf16.msra.mxu0 %v2207_v1  ;;  %v2243_v1 = vld [vmem:[#allocation7 + $0x190] ss:$8 sps:$4 sm:$0xff]  }
  0xd3   :  { %860 = vmatpush1.bf16.msra.mxu1 %v2159_v43 }
  0xd4   :  { %861 = vmatprep.subr.bf16.mxu1 %v2164_v45 }
  0xd7   :  { %862 = vmatpush1.bf16.msra.mxu1 %v2162_v0  ;;  %v2216_v0 = vld [vmem:[#allocation7 + $0x100] ss:$8 sps:$4 sm:$0xff]  }
  0xd8   :  { %863 = vmatprep.subr.bf16.mxu1 %v2167_v48  ;;  %v2219_v48 = vld [vmem:[#allocation7 + $0x110] ss:$8 sps:$4 sm:$0xff]  }
  0xdb   :  { %864 = vmatpush1.bf16.msra.mxu1 %v2165_v52  ;;  %v2225_v52 = vld [vmem:[#allocation7 + $0x130] ss:$8 sps:$4 sm:$0xff]  }
  0xdc   :  { %1928 = vmatprep.subr.bf16.mxu1 %v2264_v6  ;;  %v214_v6 = vsub.s32 2, %v2575_v22 }
  0xde   :  { %882 = vmatmul.mubr.bf16.vlgmr.msra.gmra.mrb[4].mxu1 %v2570_v35  ;;  %v2212_v35 = vld [vmem:[#allocation7 + $0xe4] ss:$8 sps:$4 sm:$0xff]  }
  0xdf   :  { %1328 = vmatprep.subr.bf16.mxu0 %v2212_v35  ;;  %1929 = vmatpush3.bf16.msra.mxu1 %v2265_v7  ;;  %v2248_v35 = vld [vmem:[#allocation7 + $0x1a4] ss:$8 sps:$4 sm:$0xff]   ;;  %v2252_v7 = vld [vmem:[#allocation7 + $0x1c0] ss:$8 sps:$4 sm:$0xff]  }
  0xe0   :  { %1329 = vmatpush1.bf16.msra.mxu0 %v2210_v2  ;;  %1930 = vmatprep.subr.bf16.mxu1 %v2266_v8  ;;  %v2246_v2 = vld [vmem:[#allocation7 + $0x1a0] ss:$8 sps:$4 sm:$0xff]   ;;  %v218_v8 = vsub.s32 3, %v2575_v22 }
  0xe1   :  { %1330 = vmatprep.subr.bf16.mxu0 %v2215_v3  ;;  %v2251_v3 = vld [vmem:[#allocation7 + $0x1b4] ss:$8 sps:$4 sm:$0xff]   ;;  %v2281_v22 = vld [vmem:[#allocation10 + $0x8] sm:$0xff]  }
  0xe3   :  { %1931 = vmatpush3.bf16.msra.mxu1 %v2267_v9  ;;  %v2257_v9 = vld [vmem:[#allocation7 + $0x1d4] ss:$8 sps:$4 sm:$0xff]  }
  0xe4   :  { %1331 = vmatpush1.bf16.msra.mxu0 %v2213_v4  ;;  %1932 = vmatprep.subr.bf16.mxu1 %v2268_v10  ;;  %v2249_v4 = vld [vmem:[#allocation7 + $0x1b0] ss:$8 sps:$4 sm:$0xff]   ;;  %v215_v10 = vrot.slane %v2581_v24, %v214_v6 }
  0xe5   :  { %1343 = vmatprep.subr.bf16.mxu0 %v2218_v5  ;;  %v2254_v5 = vld [vmem:[#allocation7 + $0x1c4] ss:$8 sps:$4 sm:$0xff]  }
  0xe7   :  { %1933 = vmatpush3.bf16.msra.mxu1 %v2269_v11  ;;  %v2255_v11 = vld [vmem:[#allocation7 + $0x1d0] ss:$8 sps:$4 sm:$0xff]  }
  0xe8   :  { %1934 = vmatprep.subr.bf16.mxu1 %v2270_v12  ;;  %v219_v12 = vrot.slane %v2581_v24, %v218_v8  ;;  %v2261_v24 = vld [vmem:[#allocation7 + $0x1f0] ss:$8 sps:$4 sm:$0xff]  }
  0xeb   :  { %1935 = vmatpush3.bf16.msra.mxu1 %v2271_v13  ;;  %v2260_v13 = vld [vmem:[#allocation7 + $0x1e4] ss:$8 sps:$4 sm:$0xff]  }
  0xec   :  { %1936 = vmatprep.subr.bf16.mxu1 %v2272_v14 }
  0xef   :  { %1937 = vmatpush3.bf16.msra.mxu1 %v2273_v15 }
  0xf0   :  { %1938 = vmatprep.subr.bf16.mxu1 %v2274_v16 }
 0x151   :  { %v797_v17 = vpop.f32.mrb[0].mxu1 }
 0x152   :  { %v799_v18 = vpop.f32.mrb[1].mxu1 }
 0x153   :  { %v801_v19 = vpop.f32.mrb[2].mxu1 }
 0x154   :  { %v803_v20 = vpop.f32.mrb[3].mxu1 }
 0x170   :  { %v754_v28 = vpop.f32.mrb[0].mxu0 }
 0x171   :  { %v755_v29 = vadd.f32 %v754_v28, %v207_v26  ;;  %v756_v30 = vpop.f32.mrb[1].mxu0 }
 0x172   :  { %v757_v31 = vadd.f32 %v756_v30, %v211_v27  ;;  %v758_v32 = vpop.f32.mrb[2].mxu0 }
 0x173   :  { %v798_v33 = vadd.f32 %v797_v17, %v755_v29  ;;  %v759_v34 = vadd.f32 %v758_v32, %v207_v26  ;;  %v760_v36 = vpop.f32.mrb[3].mxu0  ;;  %v2263_v26 = vld [vmem:[#allocation7 + $0x1f4] ss:$8 sps:$4 sm:$0xff]  }
 0x174   :  { %v800_v37 = vadd.f32 %v799_v18, %v757_v31  ;;  %v761_v38 = vadd.f32 %v760_v36, %v211_v27  ;;  %v2276_v36 = vld [vmem:[#allocation8 + $0x70] sm:$0xff]  }
 0x175   :  { %v802_v39 = vadd.f32 %v801_v19, %v759_v34  ;;  %v892_v41 = vmax.f32 %v798_v33, 0.0  ;;  %v2258_v19 = vld [vmem:[#allocation7 + $0x1e0] ss:$8 sps:$4 sm:$0xff]  }
 0x176   :  { %v804_v40 = vadd.f32 %v803_v20, %v761_v38  ;;  %v893_v43 = vmax.f32 %v800_v37, 0.0  ;;  %v2275_v34 = vld [vmem:[#allocation8 + $0x28] sm:$0xff]   ;;  %v2277_v37 = vld [vmem:[#allocation8 + $0x30] sm:$0xff]   ;;  %v2278_v38 = vld [vmem:[#allocation8 + $0x78] sm:$0xff]  }
 0x177   :  { %v896_v42 = vmax.f32 %v802_v39, 0.0  ;;  %1939 = vmatpush3.bf16.msra.mxu1 %v2275_v34  ;;  %v2279_v39 = vld [vmem:[#allocation8 + $0x38] sm:$0xff]  }
 0x178   :  { %v897_v44 = vmax.f32 %v804_v40, 0.0  ;;  %1940 = vmatprep.subr.bf16.mxu1 %v2276_v36  ;;  %v2450_v40 = vmov 0.0  }
 0x179   :  { %v900_v45 = vpack.c.bf16 %v896_v42, %v892_v41  ;;  %v968_v41 = vld [vmem:[%s2626_s4] sm:$0x3] }
 0x17a   :  { %v901_v46 = vpack.c.bf16 %v897_v44, %v893_v43  ;;  %v973_v42 = vrot.slane %v968_v41, %v206_v23  ;;  %v977_v43 = vrot.slane %v968_v41, %v210_v25  ;;  %v2282_v23 = vld [vmem:[#allocation10 + $0x10] sm:$0xff]   ;;  %v2283_v25 = vld [vmem:[#allocation10 + $0x18] sm:$0xff]  }
 0x17b   :  { %1941 = vmatpush3.bf16.msra.mxu1 %v2277_v37 }
 0x17c   :  { %1332 = vmatprep.mubr.bf16.mxu0 %v901_v46  ;;  %1942 = vmatprep.subr.bf16.mxu1 %v2278_v38 }
 0x17d   :  { %1333 = vmatmul.mubr.bf16.vlgmr.msra.gmra.mrb[4].mxu0 %v900_v45 }
 0x17e   :  { %1344 = vmatpush1.bf16.msra.mxu0 %v2216_v0 }
 0x17f   :  { %1345 = vmatprep.subr.bf16.mxu0 %v2221_v47  ;;  %1943 = vmatpush3.bf16.msra.mxu1 %v2279_v39 }
 0x180   :  { %1959 = vmatprep.subr.bf16.mxu1 %v2450_v40 }
 0x182   :  { %1346 = vmatpush1.bf16.msra.mxu0 %v2219_v48 }
 0x183   :  { %1347 = vmatprep.subr.bf16.mxu0 %v2224_v49 }
 0x186   :  { %1348 = vmatpush1.bf16.msra.mxu0 %v2222_v50 }
 0x187   :  { %1349 = vmatprep.subr.bf16.mxu0 %v2227_v51 }
 0x18a   :  { %1350 = vmatpush1.bf16.msra.mxu0 %v2225_v52 }
 0x18b   :  { %1351 = vmatprep.subr.bf16.mxu0 %v2230_v53 }
 0x18e   :  { %1352 = vmatpush1.bf16.msra.mxu0 %v2228_v54 }
 0x18f   :  { %1353 = vmatprep.subr.bf16.mxu0 %v2233_v55 }
 0x192   :  { %1354 = vmatpush1.bf16.msra.mxu0 %v2231_v56 }
 0x193   :  { %1355 = vmatprep.subr.bf16.mxu0 %v2236_v57  ;;  %v2280_v57 = vld [vmem:[#allocation10] sm:$0xff]  }
 0x196   :  { %1356 = vmatpush1.bf16.msra.mxu0 %v2234_v58  ;;  %v2284_v58 = vld [vmem:[#allocation10 + $0x20] sm:$0xff]  }
 0x197   :  { %1357 = vmatprep.subr.bf16.mxu0 %v2239_v59  ;;  %v2285_v59 = vld [vmem:[#allocation10 + $0x28] sm:$0xff]  }
 0x19a   :  { %1358 = vmatpush1.bf16.msra.mxu0 %v2237_v60  ;;  %v2286_v60 = vld [vmem:[#allocation10 + $0x30] sm:$0xff]  }
 0x19b   :  { %1359 = vmatprep.subr.bf16.mxu0 %v2242_v61  ;;  %v2287_v61 = vld [vmem:[#allocation10 + $0x38] sm:$0xff]  }
 0x19e   :  { %1360 = vmatpush1.bf16.msra.mxu0 %v2240_v62 }
 0x19f   :  { %1361 = vmatprep.subr.bf16.mxu0 %v2245_v63  ;;  %v1893_v63 = vld [vmem:[%s2628_s6] ss:$0 sm:$0xff]  ;;  %s2452_s6 = smov [#allocation11]  }
 0x1a2   :  { %1362 = vmatpush1.bf16.msra.mxu0 %v2243_v1 }
 0x1a3   :  { %1363 = vmatprep.subr.bf16.mxu0 %v2248_v35 }
 0x1a6   :  { %1364 = vmatpush1.bf16.msra.mxu0 %v2246_v2 }
 0x1a7   :  { %1365 = vmatprep.subr.bf16.mxu0 %v2251_v3 }
 0x1aa   :  { %1366 = vmatpush1.bf16.msra.mxu0 %v2249_v4 }
 0x1ab   :  { %1367 = vmatprep.subr.bf16.mxu0 %v2254_v5 }
 0x1ae   :  { %1368 = vmatpush1.bf16.msra.mxu0 %v2252_v7 }
 0x1af   :  { %1369 = vmatprep.subr.bf16.mxu0 %v2257_v9 }
 0x1b1   :  { %v883_v14 = vpop.f32.mrb[4].mxu1 }
 0x1b2   :  { %v1987_v15 = vadd.f32 %v883_v14, %v215_v10  ;;  %v885_v16 = vpop.f32.mrb[5].mxu1  ;;  %1370 = vmatpush1.bf16.msra.mxu0 %v2255_v11 }
 0x1b3   :  { %v1988_v17 = vadd.f32 %v885_v16, %v219_v12  ;;  %v887_v18 = vpop.f32.mrb[6].mxu1  ;;  %1371 = vmatprep.subr.bf16.mxu0 %v2260_v13 }
 0x1b4   :  { %v1989_v20 = vadd.f32 %v887_v18, %v215_v10  ;;  %v889_v21 = vpop.f32.mrb[7].mxu1  ;;  %v894_v28 = vmax.f32 %v1987_v15, 0.0  ;;  %v1910_v10 = vld [vmem:[%s2630_s8] ss:$0 sm:$0xff]  ;;  %s1716_s8 = sshll.u32 %s2452_s6, 4  ;;  %s1717_s8 = int_to_ptr.vmem [resolvable:$true] %s1716_s8 }
 0x1b5   :  { %v1990_v27 = vadd.f32 %v889_v21, %v219_v12  ;;  %v895_v30 = vmax.f32 %v1988_v17, 0.0  ;;  %s2406_s17 = scalar_lea.vmem %s1717_s8, 128  ;;  %p2411_p13 = scmp.lt.s32.totalorder %s1717_s8, %s1717_s8 }
 0x1b6   :  { %v898_v29 = vmax.f32 %v1989_v20, 0.0  ;;  %1372 = vmatpush1.bf16.msra.mxu0 %v2258_v19  ;;  %p2407_p12 = scmp.ne.s32.totalorder %s1717_s8, %s2406_s17  ;;  %p2412_p0 = scmp.lt.s32.totalorder %s2406_s17, %s2406_s17 }
 0x1b7   :  { %v899_v31 = vmax.f32 %v1990_v27, 0.0  ;;  %1373 = vmatprep.subr.bf16.mxu0 %v2263_v26 }
 0x1b8   :  { %v902_v32 = vpack.c.bf16 %v898_v29, %v894_v28  ;;  %p2413_p1 = por %p2412_p0, %p2411_p13 }
 0x1b9   :  { %v903_v33 = vpack.c.bf16 %v899_v31, %v895_v30 }
 0x1ba   :  { %1374 = vmatpush1.bf16.msra.mxu0 %v2261_v24  ;;  %p2414_p2 = pnand %p2413_p1, %p2407_p12 }
 0x1bb   :  { %1375 = vmatprep.mubr.bf16.mxu0 %v903_v33 }
 0x1bd   :  { %1376 = vmatmul.mubr.bf16.vlgmr.msra.gmra.mrb[4].mxu0 %v902_v32 }
 0x290   :  { %v1377_v44 = vpop.f32.mrb[4].mxu0 }
 0x291   :  { %v1991_v45 = vadd.f32 %v1377_v44, %v973_v42  ;;  %v1379_v46 = vpop.f32.mrb[5].mxu0 }
 0x292   :  { %v1992_v0 = vadd.f32 %v1379_v46, %v977_v43  ;;  %v1381_v47 = vpop.f32.mrb[6].mxu0 }
 0x293   :  { %v1993_v48 = vadd.f32 %v1381_v47, %v973_v42  ;;  %v1383_v49 = vpop.f32.mrb[7].mxu0  ;;  %v1386_v51 = vmax.f32 %v1991_v45, 0.0 }
 0x294   :  { %v1994_v50 = vadd.f32 %v1383_v49, %v977_v43  ;;  %v1387_v53 = vmax.f32 %v1992_v0, 0.0 }
 0x295   :  { %v1388_v52 = vmax.f32 %v1993_v48, 0.0 }
 0x296   :  { %v1389_v54 = vmax.f32 %v1994_v50, 0.0 }
 0x297   :  { %v1390_v55 = vpack.c.bf16 %v1388_v52, %v1386_v51 }
 0x298   :  { %v1391_v56 = vpack.c.bf16 %v1389_v54, %v1387_v53 }
 0x29a   :  { %1559 = vmatprep.mubr.bf16.mxu1 %v1391_v56 }
 0x29b   :  { %1560 = vmatmul.mubr.bf16.vlgmr.msra.gmra.mrb[8].mxu1 %v1390_v55 }
 0x29c   :  { %1960 = vmatpush3.bf16.msra.mxu1 %v2280_v57  ;;  %1975 = vmatprep.mubr.msk.bf16.mxu1 %vm2451_vm0, %v2450_v40 }
 0x29d   :  { %1961 = vmatprep.subr.bf16.mxu1 %v2450_v40 }
 0x2a0   :  { %1962 = vmatpush3.bf16.msra.mxu1 %v2281_v22 }
 0x2a1   :  { %1963 = vmatprep.subr.bf16.mxu1 %v2450_v40 }
 0x2a4   :  { %1964 = vmatpush3.bf16.msra.mxu1 %v2282_v23 }
 0x2a5   :  { %1965 = vmatprep.subr.bf16.mxu1 %v2450_v40 }
 0x2a8   :  { %1966 = vmatpush3.bf16.msra.mxu1 %v2283_v25 }
 0x2a9   :  { %1967 = vmatprep.subr.bf16.mxu1 %v2450_v40 }
 0x2ac   :  { %1968 = vmatpush3.bf16.msra.mxu1 %v2284_v58 }
 0x2ad   :  { %1969 = vmatprep.subr.bf16.mxu1 %v2450_v40 }
 0x2b0   :  { %1970 = vmatpush3.bf16.msra.mxu1 %v2285_v59 }
 0x2b1   :  { %1971 = vmatprep.subr.bf16.mxu1 %v2450_v40 }
 0x2b4   :  { %1972 = vmatpush3.bf16.msra.mxu1 %v2286_v60 }
 0x2b5   :  { %1973 = vmatprep.subr.bf16.mxu1 %v2450_v40 }
 0x2b8   :  { %1974 = vmatpush3.bf16.msra.mxu1 %v2287_v61 }
 0x36e   :  { %v1944_v62 = vpop.f32.mrb[8].mxu1 }
 0x36f   :  { %v1945_v1 = vpop.f32.mrb[9].mxu1 }
 0x370   :  { %v1946_v35 = vadd.f32 %v1945_v1, %v1944_v62  ;;  %v1947_v2 = vpop.f32.mrb[10].mxu1 }
 0x371   :  { %v1948_v3 = vpop.f32.mrb[11].mxu1 }
 0x372   :  { %v1562_v4 = vadd.f32 %v1946_v35, %v1893_v63  ;;  %v1949_v5 = vadd.f32 %v1948_v3, %v1947_v2 }
 0x374   :  { %v1565_v6 = vadd.f32 %v1949_v5, %v1893_v63  ;;  %v1568_v7 = vmax.f32 %v1562_v4, 0.0 }
 0x376   :  { %v1569_v8 = vmax.f32 %v1565_v6, 0.0 }
 0x378   :  { %v1570_v9 = vpack.c.bf16 %v1569_v8, %v1568_v7 }
 0x37a   :  { %1976 = vmatmul.mubr.bf16.vlgmr.msra.gmra.mrb[12].mxu1 %v1570_v9 }
 0x44d   :  { %v1676_v11 = vpop.f32.mrb[12].mxu1 }
 0x44e   :  { %v1677_v12 = vadd.f32 %v1910_v10, %v1676_v11  ;;  %v1977_v13 = vpop.f32.mrb[13].mxu1 }
 0x44f   :  { %v1679_v14 = vpop.f32.mrb[14].mxu1 }
 0x450   :  { %1683 = vmax.xlane.f32.xlu0 %v1677_v12  ;;  %v1978_v15 = vpop.f32.mrb[15].mxu1  ;;  %v1680_v16 = vadd.f32 %v1910_v10, %v1679_v14 }
 0x454   :  { %1685 = vmax.xlane.f32.xlu0 %v1680_v16 }
 0x4dd   :  { %v1684_v17 = vpop.xlane.xlu0 %1683 }
 0x4de   :  { %v1687_v18 = vsub.f32 %v1677_v12, %v1684_v17 }
 0x4e0   :  { %v1689_v19 = vmul.f32 1.442695, %v1687_v18 }
 0x4e1   :  { %v1686_v20 = vpop.xlane.xlu0 %1685 }
 0x4e2   :  { %2288 = vpow2.f32 %v1689_v19  ;;  %v1688_v21 = vsub.f32 %v1680_v16, %v1686_v20 }
 0x4e4   :  { %v1691_v26 = vmul.f32 1.442695, %v1688_v21 }
 0x4e6   :  { %2290 = vpow2.f32 %v1691_v26 }
 0x4ec   :  { %v2289_v27 = vpop.eup %2288 }
 0x4ed   :  { %1693 = vadd.xlane.f32.xlu1 %v2289_v27 }
 0x4f0   :  { %v2291_v28 = vpop.eup %2290 }
 0x4f1   :  { %1695 = vadd.xlane.f32.xlu1 %v2291_v28 }
 0x57a   :  { %v1694_v29 = vpop.xlane.xlu1 %1693 }
 0x57b   :  { %2292 = vrcp.f32 %v1694_v29 }
 0x57e   :  { %v1696_v30 = vpop.xlane.xlu1 %1695 }
 0x57f   :  { %2294 = vrcp.f32 %v1696_v30 }
 0x585   :  { %v2293_v31 = vpop.eup %2292 }
 0x586   :  { %v1699_v32 = vmul.f32 %v2293_v31, %v2289_v27 }
 0x589   :  { %v2295_v24 = vpop.eup %2294 }
 0x58a   :  { %v1700_v33 = vmul.f32 %v2295_v24, %v2291_v28 }
 0x58c   :  { %v1926_v34 = vpack.c.bf16 %v1700_v33, %v1699_v32 }
 0x58e   :  { %1927 = vst [vmem:[#allocation11] sm:$0xff] %v1926_v34  }
 0x58f   :  { %2417 = shalt.err (!%p2414_p2)
}
 0x590   :  { %s2418_s16 = scalar_lea.hbm %s2631_s9, 128 }
 0x591   :  { %p2419_p3 = scmp.ne.s32.totalorder %s2631_s9, %s2418_s16  ;;  %p2422_p4 = scmp.lt.u32.totalorder %s2418_s16, %s2631_s9 }
 0x593   :  { %p2424_p5 = pnand %p2422_p4, %p2419_p3 }
 0x595   :  { %2427 = shalt.err (!%p2424_p5)
}
 0x596   :  { %1722 = dma.vmem_to_hbm [thread:$0]  %s1717_s8, 128, %s2631_s9, [#allocation4], %s2440_s1, %s2440_s1, %s2441_s10  }
 0x597   :  { %2434 = dma.done.wait [#allocation4], 128  }
 0x598   :  { %2435 = vsyncadd [#allocation4], 4294967168 }
 0x599   :  { %1726 = vsyncpa [#allocation3], 1 }
 0x59a   :  { %1727 = vsyncpa [#allocation6], 1 }
 0x59b   :  { %1728 = vsyncpa [#allocation9], 1 }
 0x59c   :  { %1729 = vsyncpa [#allocation4], 1 }

</bundles_post_ra>
